<compile_context>
chip_gen: v5e
topology: v5e:2x2
jax: 0.10.0
libtpu: 0.0.40
codegen_flags: <defaults>
</compile_context>

<pallas_src>
import jax
import jax.numpy as jnp
from jax.experimental import pallas as pl
from jax.experimental.pallas import tpu as pltpu

BN_EPS = 1e-5
NEG_SLOPE = 0.01          # PyTorch LeakyReLU default
LANE = 128                # TPU lane width
H1, H2, H3 = 64, 64, 32   # hidden widths from the module definition


def _round_up(x, m):
    return (x + m - 1) // m * m


# ----------------------------------------------------------------------------
# Kernel
# ----------------------------------------------------------------------------
def mlp_kernel(x_ref, w1_ref, w2_ref, w3_ref, w4_ref, b_ref, out_ref):
    """Fused eval-mode MLP for one batch tile.

    x_ref:   [TILE_N, input_dim]   native dtype (cast to bf16 in-kernel)
    wK_ref:  [in_K, out_K]         bf16 (eval-mode BN already folded in)
    b_ref:   [4, NCP]              f32  (row k = folded bias of layer k, 0-padded)
    out_ref: [TILE_N, NCP]         bf16 (lane-dense; padded cols are exactly 0)
    """

    def layer(h_bf16, w_ref, bias_row, out_width, leaky):
        # MXU matmul with f32 accumulation; bias + LeakyReLU stay f32 (v5e-safe).
        acc = jnp.dot(h_bf16, w_ref[...], preferred_element_type=jnp.float32)
        acc = acc + b_ref[bias_row:bias_row + 1, :out_width]
        if leaky:
            # max(x, a*x) == LeakyReLU(x) for 0 < a < 1; 2 VALU ops vs 3.
            acc = jnp.maximum(acc, NEG_SLOPE * acc)
        return acc

    h = x_ref[...].astype(jnp.bfloat16)                         # in-kernel cast (free)
    h = layer(h, w1_ref, 0, H1, True).astype(jnp.bfloat16)      # Linear+BN+LeakyReLU (+Dropout=id)
    h = layer(h, w2_ref, 1, H2, True).astype(jnp.bfloat16)      # Linear+BN+LeakyReLU (+Dropout=id)
    h = layer(h, w3_ref, 2, H3, True).astype(jnp.bfloat16)      # Linear+BN+LeakyReLU
    out_ref[...] = layer(h, w4_ref, 3, out_ref.shape[-1], False).astype(out_ref.dtype)


# ----------------------------------------------------------------------------
# Host-side parameter folding / packing
# ----------------------------------------------------------------------------
def fold_bn_params(raw_params, num_classes):
    """Fold eval-mode BatchNorm into the preceding Linear; pad head to lane-dense width."""
    (w1, b1, g1, be1, m1, v1,
     w2, b2, g2, be2, m2, v2,
     w3, b3, g3, be3, m3, v3,
     w4, b4) = raw_params

    def fold(w, b, g, be, m, v):
        scale = g * jax.lax.rsqrt(v + BN_EPS)            # [out]
        return w * scale[None, :], (b - m) * scale + be  # exact in eval mode

    fw1, fb1 = fold(w1, b1, g1, be1, m1, v1)
    fw2, fb2 = fold(w2, b2, g2, be2, m2, v2)
    fw3, fb3 = fold(w3, b3, g3, be3, m3, v3)

    # Head: pad num_classes up to a lane-dense multiple of 128 with ZERO cols.
    ncp = _round_up(max(num_classes, 1), LANE)
    fw4 = jnp.zeros((w4.shape[0], ncp), jnp.float32).at[:, :num_classes].set(w4)
    fb4 = jnp.zeros((ncp,), jnp.float32).at[:num_classes].set(b4)

    # One [4, ncp] f32 bias buffer (row k = layer k).  Sized to ncp so heads with
    # num_classes > 128 are handled correctly (fixes prior truncation bug).
    biases = jnp.zeros((4, ncp), jnp.float32)
    for i, fb in enumerate((fb1, fb2, fb3, fb4)):
        biases = biases.at[i, :fb.shape[0]].set(fb)

    # NOTE: BN scale is quantized with the bf16 weights; fine for ~5e-2 accuracy.
    weights = [w.astype(jnp.bfloat16) for w in (fw1, fw2, fw3, fw4)]
    return weights, biases


# ----------------------------------------------------------------------------
# Wrapper
# ----------------------------------------------------------------------------
def torch_mlp_forward(x, raw_params, num_classes, *, tile_n=2048):
    """Eval-mode TorchMLP forward via one batch-tiled Pallas call."""
    n, input_dim = x.shape
    weights, biases = fold_bn_params(raw_params, num_classes)
    ncp = weights[3].shape[1]  # padded (lane-dense) head width

    # Batch tile: multiple of 8 sublanes.  Cap so there are >= 2 grid steps
    # whenever n > 8, so the "parallel" batch axis can shard across both v7x
    # TensorCores.  tile_n=2048 keeps per-step double-buffered I/O (f32 x block
    # + bf16 out block + resident weights) at a few MiB — well under the 32 MiB
    # scoped-VMEM limit requested below on all of v5e / v6e / v7x.
    tile_cap = _round_up(pl.cdiv(n, 2), 8)
    tile_n = max(8, min(_round_up(tile_n, 8), tile_cap))
    grid = (pl.cdiv(n, tile_n),)  # ragged last block is masked by Pallas

    rep = lambda i: (0, 0)        # weights/biases resident across all grid steps

    flops = 2 * n * (input_dim * H1 + H1 * H2 + H2 * H3 + H3 * ncp)
    bytes_accessed = (x.size * x.dtype.itemsize
                      + sum(w.size for w in weights) * 2
                      + biases.size * 4
                      + n * ncp * 2)  # bf16 output

    out = pl.pallas_call(
        mlp_kernel,
        out_shape=jax.ShapeDtypeStruct((n, ncp), jnp.bfloat16),
        grid=grid,
        in_specs=[
            pl.BlockSpec((tile_n, input_dim), lambda i: (i, 0)),
            pl.BlockSpec(weights[0].shape, rep),
            pl.BlockSpec(weights[1].shape, rep),
            pl.BlockSpec(weights[2].shape, rep),
            pl.BlockSpec(weights[3].shape, rep),
            pl.BlockSpec(biases.shape, rep),
        ],
        out_specs=pl.BlockSpec((tile_n, ncp), lambda i: (i, 0)),
        compiler_params=pltpu.CompilerParams(
            dimension_semantics=("parallel",),      # megacore sharding on v7x
            vmem_limit_bytes=32 * 1024 * 1024),
        cost_estimate=pl.CostEstimate(
            flops=flops, transcendentals=0, bytes_accessed=bytes_accessed),
    )(x, *weights, biases)

    # Tiny post-op: slice off the zero-padded lanes, restore module output dtype.
    return out[:, :num_classes].astype(jnp.float32)


# ----------------------------------------------------------------------------
# Synthetic parameters + references
# ----------------------------------------------------------------------------
def make_params(key, input_dim, num_classes):
    """Deterministic synthetic params with TorchMLP shapes (weights stored [in, out])."""
    dims = [(input_dim, H1), (H1, H2), (H2, H3), (H3, num_classes)]
    keys = jax.random.split(key, 32)
    ki = iter(range(32))
    params = []

    def rnd(shape, k, scale=0.1):
        return scale * jax.random.normal(k, shape, dtype=jnp.float32)

    for li, (fin, fout) in enumerate(dims):
        w = rnd((fin, fout), keys[next(ki)], scale=1.0 / float(fin) ** 0.5)
        b = rnd((fout,), keys[next(ki)])
        params += [w, b]
        if li < 3:  # first three linears are followed by BatchNorm1d
            gamma = 1.0 + rnd((fout,), keys[next(ki)])
            beta = rnd((fout,), keys[next(ki)])
            mean = rnd((fout,), keys[next(ki)])
            var = 1.0 + 0.1 * jax.nn.softplus(
                jax.random.normal(keys[next(ki)], (fout,), dtype=jnp.float32))
            params += [gamma, beta, mean, var]
    return params


def reference_forward_f32(x, raw_params):
    """Plain-JAX f32 eval-mode forward of the original module (unfolded BN)."""
    (w1, b1, g1, be1, m1, v1,
     w2, b2, g2, be2, m2, v2,
     w3, b3, g3, be3, m3, v3,
     w4, b4) = raw_params

    def block(h, w, b, g, be, m, v):
        h = h @ w + b
        h = (h - m) * jax.lax.rsqrt(v + BN_EPS) * g + be
        return jnp.where(h > 0, h, NEG_SLOPE * h)

    h = block(x, w1, b1, g1, be1, m1, v1)
    h = block(h, w2, b2, g2, be2, m2, v2)
    h = block(h, w3, b3, g3, be3, m3, v3)
    return h @ w4 + b4


def reference_forward_folded_bf16(x, weights, biases, num_classes):
    """Mirrors the kernel math (bf16 matmul operands, f32 accum, bf16 output)."""
    h = x.astype(jnp.bfloat16)
    widths = (H1, H2, H3, weights[3].shape[1])
    for i, (w, width) in enumerate(zip(weights, widths)):
        acc = jnp.dot(h, w, preferred_element_type=jnp.float32)
        acc = acc + biases[i:i + 1, :width]
        if i < 3:
            acc = jnp.maximum(acc, NEG_SLOPE * acc)
        h = acc.astype(jnp.bfloat16)
    return h[:, :num_classes].astype(jnp.float32)


if __name__ == "__main__":
    batch, input_dim, num_classes = 8, 16, 10
    key = jax.random.PRNGKey(0)
    kx, kp = jax.random.split(key)

    x = jax.random.normal(kx, (batch, input_dim), dtype=jnp.float32)
    raw_params = make_params(kp, input_dim, num_classes)

    out = torch_mlp_forward(x, raw_params, num_classes)
    out = jax.block_until_ready(out)
    assert out.shape == (batch, num_classes)

    # Exact-path check (same bf16/f32 math as the kernel; tolerance covers one
    # bf16 ulp of possible accumulation-order difference at the final rounding).
    weights, biases = fold_bn_params(raw_params, num_classes)
    ref_exact = reference_forward_folded_bf16(x, weights, biases, num_classes)
    assert jnp.allclose(out, ref_exact, atol=2e-2, rtol=2e-2), \
        float(jnp.max(jnp.abs(out - ref_exact)))

    # Semantic check against the full-precision, unfolded module forward.
    ref_f32 = reference_forward_f32(x, raw_params)
    assert jnp.allclose(out, ref_f32, atol=6e-2, rtol=6e-2), \
        float(jnp.max(jnp.abs(out - ref_f32)))

    print("KERNEL_OK")
</pallas_src>

<mosaic_0001>
module attributes {stable_mosaic.version = 11 : i64} {
  func.func @mlp_kernel(%arg0: i32, %arg1: memref<8x16xf32, #tpu.memory_space<vmem>>, %arg2: memref<16x64xbf16, #tpu.memory_space<vmem>>, %arg3: memref<64x64xbf16, #tpu.memory_space<vmem>>, %arg4: memref<64x32xbf16, #tpu.memory_space<vmem>>, %arg5: memref<32x128xbf16, #tpu.memory_space<vmem>>, %arg6: memref<4x128xf32, #tpu.memory_space<vmem>>, %arg7: memref<8x128xbf16, #tpu.memory_space<vmem>>) attributes {dimension_semantics = [#tpu.dimension_semantics<parallel>], iteration_bounds = array<i64: 1>, scalar_prefetch = 0 : i64, scratch_operands = 0 : i64, tpu.core_type = #tpu.core_type<tc>, window_params = [{transform_indices = @transform_0, window_bounds = array<i64: 8, 16>}, {pipeline_mode = #tpu.pipeline_mode<synchronous>, transform_indices = @transform_1, window_bounds = array<i64: 16, 64>}, {pipeline_mode = #tpu.pipeline_mode<synchronous>, transform_indices = @transform_2, window_bounds = array<i64: 64, 64>}, {pipeline_mode = #tpu.pipeline_mode<synchronous>, transform_indices = @transform_3, window_bounds = array<i64: 64, 32>}, {pipeline_mode = #tpu.pipeline_mode<synchronous>, transform_indices = @transform_4, window_bounds = array<i64: 32, 128>}, {pipeline_mode = #tpu.pipeline_mode<synchronous>, transform_indices = @transform_5, window_bounds = array<i64: 4, 128>}, {transform_indices = @transform_6, window_bounds = array<i64: 8, 128>}]} {
    %c0 = arith.constant 0 : index
    %c0_0 = arith.constant 0 : index
    %0 = vector.load %arg1[%c0, %c0_0] : memref<8x16xf32, #tpu.memory_space<vmem>>, vector<8x16xf32>
    %1 = arith.truncf %0 : vector<8x16xf32> to vector<8x16xbf16>
    %c0_1 = arith.constant 0 : index
    %c0_2 = arith.constant 0 : index
    %2 = vector.load %arg2[%c0_1, %c0_2] : memref<16x64xbf16, #tpu.memory_space<vmem>>, vector<16x64xbf16>
    %cst = arith.constant dense<0.000000e+00> : vector<8x64xf32>
    %3 = tpu.matmul %1, %2, %cst {dimension_numbers = #tpu.dot_dimension_numbers<[1], [0], [0], [1], [0, 0, 1, 1], [], []>} : vector<8x16xbf16>, vector<16x64xbf16>, vector<8x64xf32> -> vector<8x64xf32>
    %c0_3 = arith.constant 0 : index
    %c0_4 = arith.constant 0 : index
    %4 = vector.load %arg6[%c0_3, %c0_4] : memref<4x128xf32, #tpu.memory_space<vmem>>, vector<1x64xf32>
    %5 = vector.broadcast %4 : vector<1x64xf32> to vector<8x64xf32>
    %6 = arith.addf %3, %5 : vector<8x64xf32>
    %cst_5 = arith.constant 0.00999999977 : f32
    %7 = vector.broadcast %cst_5 : f32 to vector<8x64xf32>
    %8 = arith.mulf %7, %6 : vector<8x64xf32>
    %9 = arith.maximumf %6, %8 : vector<8x64xf32>
    %10 = arith.truncf %9 : vector<8x64xf32> to vector<8x64xbf16>
    %c0_6 = arith.constant 0 : index
    %c0_7 = arith.constant 0 : index
    %11 = vector.load %arg3[%c0_6, %c0_7] : memref<64x64xbf16, #tpu.memory_space<vmem>>, vector<64x64xbf16>
    %cst_8 = arith.constant dense<0.000000e+00> : vector<8x64xf32>
    %12 = tpu.matmul %10, %11, %cst_8 {dimension_numbers = #tpu.dot_dimension_numbers<[1], [0], [0], [1], [0, 0, 1, 1], [], []>} : vector<8x64xbf16>, vector<64x64xbf16>, vector<8x64xf32> -> vector<8x64xf32>
    %c1 = arith.constant 1 : index
    %c0_9 = arith.constant 0 : index
    %13 = vector.load %arg6[%c1, %c0_9] : memref<4x128xf32, #tpu.memory_space<vmem>>, vector<1x64xf32>
    %14 = vector.broadcast %13 : vector<1x64xf32> to vector<8x64xf32>
    %15 = arith.addf %12, %14 : vector<8x64xf32>
    %cst_10 = arith.constant 0.00999999977 : f32
    %16 = vector.broadcast %cst_10 : f32 to vector<8x64xf32>
    %17 = arith.mulf %16, %15 : vector<8x64xf32>
    %18 = arith.maximumf %15, %17 : vector<8x64xf32>
    %19 = arith.truncf %18 : vector<8x64xf32> to vector<8x64xbf16>
    %c0_11 = arith.constant 0 : index
    %c0_12 = arith.constant 0 : index
    %20 = vector.load %arg4[%c0_11, %c0_12] : memref<64x32xbf16, #tpu.memory_space<vmem>>, vector<64x32xbf16>
    %cst_13 = arith.constant dense<0.000000e+00> : vector<8x32xf32>
    %21 = tpu.matmul %19, %20, %cst_13 {dimension_numbers = #tpu.dot_dimension_numbers<[1], [0], [0], [1], [0, 0, 1, 1], [], []>} : vector<8x64xbf16>, vector<64x32xbf16>, vector<8x32xf32> -> vector<8x32xf32>
    %c2 = arith.constant 2 : index
    %c0_14 = arith.constant 0 : index
    %22 = vector.load %arg6[%c2, %c0_14] : memref<4x128xf32, #tpu.memory_space<vmem>>, vector<1x32xf32>
    %23 = vector.broadcast %22 : vector<1x32xf32> to vector<8x32xf32>
    %24 = arith.addf %21, %23 : vector<8x32xf32>
    %cst_15 = arith.constant 0.00999999977 : f32
    %25 = vector.broadcast %cst_15 : f32 to vector<8x32xf32>
    %26 = arith.mulf %25, %24 : vector<8x32xf32>
    %27 = arith.maximumf %24, %26 : vector<8x32xf32>
    %28 = arith.truncf %27 : vector<8x32xf32> to vector<8x32xbf16>
    %c0_16 = arith.constant 0 : index
    %c0_17 = arith.constant 0 : index
    %29 = vector.load %arg5[%c0_16, %c0_17] : memref<32x128xbf16, #tpu.memory_space<vmem>>, vector<32x128xbf16>
    %cst_18 = arith.constant dense<0.000000e+00> : vector<8x128xf32>
    %30 = tpu.matmul %28, %29, %cst_18 {dimension_numbers = #tpu.dot_dimension_numbers<[1], [0], [0], [1], [0, 0, 1, 1], [], []>} : vector<8x32xbf16>, vector<32x128xbf16>, vector<8x128xf32> -> vector<8x128xf32>
    %c3 = arith.constant 3 : index
    %c0_19 = arith.constant 0 : index
    %31 = vector.load %arg6[%c3, %c0_19] : memref<4x128xf32, #tpu.memory_space<vmem>>, vector<1x128xf32>
    %32 = vector.broadcast %31 : vector<1x128xf32> to vector<8x128xf32>
    %33 = arith.addf %30, %32 : vector<8x128xf32>
    %34 = arith.truncf %33 : vector<8x128xf32> to vector<8x128xbf16>
    %c0_20 = arith.constant 0 : index
    %c0_21 = arith.constant 0 : index
    %35 = vector.load %arg7[%c0_20, %c0_21] : memref<8x128xbf16, #tpu.memory_space<vmem>>, vector<8x128xbf16>
    tpu.vector_store %arg7[%c0_20, %c0_21], %34 {strides = array<i32>} : memref<8x128xbf16, #tpu.memory_space<vmem>>, vector<8x128xbf16>,
    return
  }
  func.func @transform_0(%arg0: i32) -> (i32, i32) {
    %c0_i32 = arith.constant 0 : i32
    %c0_i32_0 = arith.constant 0 : i32
    return %arg0, %c0_i32 : i32, i32
  }
  func.func @transform_1(%arg0: i32) -> (i32, i32) {
    %c0_i32 = arith.constant 0 : i32
    %c0_i32_0 = arith.constant 0 : i32
    %c0_i32_1 = arith.constant 0 : i32
    return %c0_i32, %c0_i32_0 : i32, i32
  }
  func.func @transform_2(%arg0: i32) -> (i32, i32) {
    %c0_i32 = arith.constant 0 : i32
    %c0_i32_0 = arith.constant 0 : i32
    %c0_i32_1 = arith.constant 0 : i32
    return %c0_i32, %c0_i32_0 : i32, i32
  }
  func.func @transform_3(%arg0: i32) -> (i32, i32) {
    %c0_i32 = arith.constant 0 : i32
    %c0_i32_0 = arith.constant 0 : i32
    %c0_i32_1 = arith.constant 0 : i32
    return %c0_i32, %c0_i32_0 : i32, i32
  }
  func.func @transform_4(%arg0: i32) -> (i32, i32) {
    %c0_i32 = arith.constant 0 : i32
    %c0_i32_0 = arith.constant 0 : i32
    %c0_i32_1 = arith.constant 0 : i32
    return %c0_i32, %c0_i32_0 : i32, i32
  }
  func.func @transform_5(%arg0: i32) -> (i32, i32) {
    %c0_i32 = arith.constant 0 : i32
    %c0_i32_0 = arith.constant 0 : i32
    %c0_i32_1 = arith.constant 0 : i32
    return %c0_i32, %c0_i32_0 : i32, i32
  }
  func.func @transform_6(%arg0: i32) -> (i32, i32) {
    %c0_i32 = arith.constant 0 : i32
    %c0_i32_0 = arith.constant 0 : i32
    return %arg0, %c0_i32 : i32, i32
  }
}

</mosaic_0001>

<bundles_post_ra>
// kernel: tpu_custom_call.1
= control target key start
LH: loop header
LB: loop body
LE: loop exit
PB: predicated region body
PF: predicated region fallthrough
CT: control target
= control target key end

     0   :  { %11 = vsyncpa [#allocation3], 0  ;;  %s486_s0 = inlined_call_operand.hbm [shape: f32[8,16], index: 0, kind: input, shape index: {}]   ;;  %s487_s1 = inlined_call_operand.hbm [shape: bf16[16,64], index: 1, kind: input, shape index: {}]   ;;  %s488_s2 = inlined_call_operand.vmem [shape: bf16[64,64], index: 2, kind: input, shape index: {}]   ;;  %s489_s3 = inlined_call_operand.vmem [shape: bf16[64,32], index: 3, kind: input, shape index: {}]   ;;  %s490_s4 = inlined_call_operand.vmem [shape: bf16[32,128], index: 4, kind: input, shape index: {}]   ;;  %s491_s5 = inlined_call_operand.vmem [shape: f32[4,128], index: 5, kind: input, shape index: {}]   ;;  %s492_s6 = inlined_call_operand.hbm [shape: bf16[8,128], index: 6, kind: output, shape index: {}]  }
   0x1   :  { %12 = vsyncpa [#allocation6], 0 }
   0x2   :  { %13 = vsyncpa [#allocation4], 0  ;;  %s19_s23 = sshll.u32 %s486_s0, 4  ;;  %s395_s24 = smov [#allocation2]   ;;  %s20_s23 = int_to_ptr.hbm [resolvable:$true] %s19_s23 }
   0x3   :  { %s21_s25 = sshll.u32 %s395_s24, 4  ;;  %s29_s28 = sshll.u32 %s487_s1, 4  ;;  %s22_s25 = int_to_ptr.vmem [resolvable:$true] %s21_s25  ;;  %s30_s28 = int_to_ptr.hbm [resolvable:$true] %s29_s28 }
   0x4   :  { %24 = dma.hbm_to_vmem [thread:$0]  %s20_s23, 128, %s22_s25, [#allocation3]  }
   0x5   :  { %s396_s29 = smov [#allocation5]   ;;  %s397_s7 = smov 64  }
   0x6   :  { %s31_s30 = sshll.u32 %s396_s29, 4  ;;  %s398_s8 = smov 4   ;;  %s32_s30 = int_to_ptr.vmem [resolvable:$true] %s31_s30 }
   0x7   :  { %37 = dma.hbm_to_vmem [thread:$0]  %s30_s28, 128, %s32_s30, [#allocation6], %s397_s7, %s397_s7, %s398_s8  }
   0x8   :  { %389 = dma.done.wait [#allocation3], 128  }
   0x9   :  { %390 = vsyncadd [#allocation3], 4294967168 }
   0xa   :  { %391 = dma.done.wait [#allocation6], 128  }
   0xb   :  { %392 = vsyncadd [#allocation6], 4294967168  ;;  %v297_v0 = vld [vmem:[#allocation5] sm:$0xff]  ;;  %v55_v1 = vld [vmem:[#allocation2] sm:$0xff]  ;;  %vm67_vm0 = vcmask 130048   ;;  %vm121_vm1 = vcmask 523264  }
   0xc   :  { %v301_v2 = vld [vmem:[%s488_s2 + $0x18] sm:$0xff]  ;;  %v56_v3 = vpack.c.bf16 %v55_v1, %v55_v1  ;;  %v300_v4 = vld [vmem:[%s488_s2 + $0x10] sm:$0xff]  ;;  %78 = vmatpush.bf16.msra.mxu0 %v297_v0  ;;  %v299_v5 = vld [vmem:[%s488_s2 + $0x8] sm:$0xff]  ;;  %vm212_vm2 = vcmask 261120   ;;  %s399_s0 = smov [#allocation7]   ;;  %s238_s10 = sshll.u32 %s492_s6, 4  ;;  %s239_s10 = int_to_ptr.hbm [resolvable:$true] %s238_s10 }
   0xd   :  { %129 = vmatpush.bf16.msra.mxu1 %v301_v2  ;;  %v298_v6 = vld [vmem:[%s488_s2] sm:$0xff]  ;;  %v305_v7 = vld [vmem:[%s489_s3 + $0x18] sm:$0xff]  ;;  %v304_v8 = vld [vmem:[%s489_s3 + $0x10] sm:$0xff] }
   0xe   :  { %182 = vmatpush.bf16.msra.mxu2 %v305_v7  ;;  %v313_v9 = vld [vmem:[%s491_s5] ss:$0 sm:$0xff]  ;;  %v303_v16 = vld [vmem:[%s489_s3 + $0x8] sm:$0xff]  ;;  %v314_v18 = vld [vmem:[%s491_s5 + $0x1] ss:$0 sm:$0xff] }
   0xf   :  { %253 = vmatmul.msk.bf16.vlgmr.msra.gmra.mxu0 %vm67_vm0, %v56_v3  ;;  %v302_v17 = vld [vmem:[%s489_s3] sm:$0xff]  ;;  %v307_v25 = vld [vmem:[%s490_s4 + $0x8] sm:$0xff] }
  0x10   :  { %222 = vmatpush.bf16.msra.mxu3 %v307_v25  ;;  %v306_v26 = vld [vmem:[%s490_s4] sm:$0xff]  ;;  %s236_s4 = sshll.u32 %s399_s0, 4  ;;  %s237_s4 = int_to_ptr.vmem [resolvable:$true] %s236_s4 }
  0x11   :  { %130 = vmatpush.bf16.msra.mxu1 %v300_v4  ;;  %v315_v27 = vld [vmem:[%s491_s5 + $0x2] ss:$0 sm:$0xff]  ;;  %v316_v34 = vld [vmem:[%s491_s5 + $0x3] ss:$0 sm:$0xff] }
  0x12   :  { %183 = vmatpush.bf16.msra.mxu2 %v304_v8 }
  0x14   :  { %223 = vmatpush.bf16.msra.mxu3 %v306_v26 }
  0x15   :  { %131 = vmatpush.bf16.msra.mxu1 %v299_v5 }
  0x16   :  { %184 = vmatpush.bf16.msra.mxu2 %v303_v16 }
  0x19   :  { %132 = vmatpush.bf16.msra.mxu1 %v298_v6 }
  0x1a   :  { %185 = vmatpush.bf16.msra.mxu2 %v302_v17 }
  0x8c   :  { %v80_v10 = vpop.f32.mrf.mxu0 }
  0x8d   :  { %v81_v11 = vadd.f32 %v313_v9, %v80_v10 }
  0x8f   :  { %v84_v12 = vmul.f32 0.01, %v81_v11 }
  0x91   :  { %v85_v13 = vmax.f32 %v81_v11, %v84_v12 }
  0x93   :  { %v86_v14 = vpack.c.bf16 %v85_v13, %v85_v13 }
  0x94   :  { %v82_v15 = vpop.f32.mrf.mxu0 }
  0x95   :  { %270 = vmatmul.msk.bf16.vlgmr.msra.gmra.mxu1 %vm121_vm1, %v86_v14 }
 0x112   :  { %v134_v19 = vpop.f32.mrf.mxu1 }
 0x113   :  { %v135_v20 = vadd.f32 %v314_v18, %v134_v19 }
 0x115   :  { %v138_v21 = vmul.f32 0.01, %v135_v20 }
 0x117   :  { %v139_v22 = vmax.f32 %v135_v20, %v138_v21 }
 0x119   :  { %v140_v23 = vpack.c.bf16 %v139_v22, %v139_v22 }
 0x11a   :  { %v136_v24 = vpop.f32.mrf.mxu1 }
 0x11b   :  { %287 = vmatmul.msk.bf16.vlgmr.msra.gmra.mxu2 %vm121_vm1, %v140_v23 }
 0x19e   :  { %v187_v28 = vpop.f32.mrf.mxu2 }
 0x19f   :  { %v188_v29 = vadd.f32 %v315_v27, %v187_v28 }
 0x1a1   :  { %v191_v30 = vmul.f32 0.01, %v188_v29 }
 0x1a3   :  { %v192_v31 = vmax.f32 %v188_v29, %v191_v30 }
 0x1a5   :  { %v193_v32 = vpack.c.bf16 %v192_v31, %v192_v31 }
 0x1a6   :  { %v189_v33 = vpop.f32.mrf.mxu2 }
 0x1a7   :  { %296 = vmatmul.msk.bf16.vlgmr.msra.gmra.mxu3 %vm212_vm2, %v193_v32 }
 0x22a   :  { %v225_v35 = vpop.f32.mrf.mxu3 }
 0x22b   :  { %v226_v36 = vadd.f32 %v316_v34, %v225_v35 }
 0x22d   :  { %v229_v37 = vpack.c.bf16 %v226_v36, %v226_v36 }
 0x22f   :  { %230 = vst [vmem:[#allocation7] sm:$0xf] %v229_v37 }
 0x230   :  { %241 = dma.vmem_to_hbm [thread:$0]  %s237_s4, 64, %s239_s10, [#allocation4]  }
 0x232   :  { %v227_v38 = vpop.f32.mrf.mxu3 }
 0x233   :  { %393 = dma.done.wait [#allocation4], 64  }
 0x234   :  { %394 = vsyncadd [#allocation4], 4294967232 }
 0x235   :  { %246 = vsyncpa [#allocation3], 1 }
 0x236   :  { %247 = vsyncpa [#allocation6], 1 }
 0x237   :  { %248 = vsyncpa [#allocation4], 1 }

</bundles_post_ra>
